<compile_context>
chip_gen: v7x
topology: tpu7x:2x2x1
jax: 0.10.0
libtpu: 0.0.40
codegen_flags: <defaults>
</compile_context>

<pallas_src>
import functools

import jax
import jax.numpy as jnp
from jax import lax
from jax.experimental import pallas as pl
from jax.experimental.pallas import tpu as pltpu

EPS = 1e-5


def _round_up(n, m):
    return ((n + m - 1) // m) * m


def _hooknorm_kernel(x_ref, gamma_ref, beta_ref, y_ref, *, true_h):
    """LayerNorm over the last (lane) axis of one (block_rows, Hp) tile."""
    h_pad = x_ref.shape[-1]
    x = x_ref[...].astype(jnp.float32)
    if true_h != h_pad:  # lane padding present -> keep it out of the statistics
        mask = lax.broadcasted_iota(jnp.int32, (1, h_pad), 1) < true_h
        x = jnp.where(mask, x, 0.0)
    inv_h = jnp.float32(1.0 / true_h)
    # Two-pass mean/var kept on purpose (numerically robust); the kernel is
    # HBM-bound so the extra XLU reduction is hidden filler.
    mean = jnp.sum(x, axis=-1, keepdims=True) * inv_h
    centered = x - mean  # `x` is dead after this -> ~2 live f32 tiles
    if true_h != h_pad:
        centered = jnp.where(mask, centered, 0.0)
    var = jnp.sum(centered * centered, axis=-1, keepdims=True) * inv_h
    inv_std = lax.rsqrt(var + EPS)
    gamma = gamma_ref[...].astype(jnp.float32)
    beta = beta_ref[...].astype(jnp.float32)
    y_ref[...] = (centered * inv_std * gamma + beta).astype(y_ref.dtype)


def _tile_plan(rows, h_pad, itemsize, sub):
    """Choose (block_rows, vmem_limit_bytes) from H and the chip's VMEM."""
    try:
        vmem_cap = int(pltpu.get_tpu_info().vmem_capacity_bytes)
    except Exception:  # pragma: no cover - conservative fallback
        vmem_cap = 128 << 20
    # ~51 MiB on v7x (64 MiB physical), ~100 MiB on v6e/v5e (128 MiB physical).
    budget = min(int(vmem_cap * 0.8), 100 << 20)

    # Footprint(br) ~= double-buffered in/out tiles + ~2 live f32 tiles + params.
    per_row = (4 * itemsize + 2 * 4) * h_pad
    fixed = 4 * h_pad * 4 + (2 << 20)

    br_perf = (8 << 20) // max(h_pad * itemsize, 1)     # ~8 MiB input tiles
    br_vmem = max((budget - fixed) // per_row, 1)       # fits the VMEM budget
    br_steps = -(-rows // 8)                            # keep >= ~8 grid steps
    br = max(min(br_perf, br_vmem, br_steps), 1)
    br = max((br // sub) * sub, sub)                    # sublane granularity
    br = min(br, _round_up(rows, sub))                  # never more than all rows

    footprint = per_row * br + fixed
    vmem_limit = int(min(max(footprint * 5 // 4, 16 << 20), budget))
    vmem_limit = max(vmem_limit, footprint)             # never below actual usage
    return br, vmem_limit


def _layernorm_pallas(x2d, gamma2d, beta2d, block_rows, vmem_limit, true_h):
    rows, h_pad = x2d.shape
    grid = (pl.cdiv(rows, block_rows),)  # ragged last block: masked by Pallas
    row_spec = pl.BlockSpec((block_rows, h_pad), lambda i: (i, 0))
    param_spec = pl.BlockSpec((1, h_pad), lambda i: (0, 0))  # constant -> hoisted

    return pl.pallas_call(
        functools.partial(_hooknorm_kernel, true_h=true_h),
        grid_spec=pltpu.PrefetchScalarGridSpec(
            num_scalar_prefetch=0,
            grid=grid,
            in_specs=[row_spec, param_spec, param_spec],
            out_specs=row_spec,
        ),
        out_shape=jax.ShapeDtypeStruct((rows, h_pad), x2d.dtype),
        compiler_params=pltpu.CompilerParams(
            dimension_semantics=("parallel",),  # shard rows across TCs (v7x)
            vmem_limit_bytes=int(vmem_limit),
        ),
    )(x2d, gamma2d, beta2d)


@functools.partial(jax.jit, static_argnames=("block_rows",))
def hook_norm(x, gamma, beta, *, block_rows=None):
    """Returns (hidden_before_norm, layernorm(x)) for x of shape (B, S, H).

    hidden_before_norm is x itself (PyTorch stashes a reference, not a copy),
    so no extra HBM traffic is spent on it.
    """
    B, S, H = x.shape
    rows = B * S

    itemsize = jnp.dtype(x.dtype).itemsize
    sub = {4: 8, 2: 16, 1: 32}.get(itemsize, 8)  # sublane granularity per dtype

    # Lane-dense stores: pad H to a multiple of 128 only when necessary (rare).
    h_pad = _round_up(H, 128)
    x2d = x.reshape(rows, H)
    gamma2d = gamma.reshape(1, H)
    beta2d = beta.reshape(1, H)
    if h_pad != H:
        x2d = jnp.pad(x2d, ((0, 0), (0, h_pad - H)))
        gamma2d = jnp.pad(gamma2d, ((0, 0), (0, h_pad - H)))
        beta2d = jnp.pad(beta2d, ((0, 0), (0, h_pad - H)))

    br, vmem_limit = _tile_plan(rows, h_pad, itemsize, sub)
    if block_rows is not None:  # explicit override, sanitized
        br = min(max(_round_up(int(block_rows), sub), sub), _round_up(rows, sub))

    y2d = _layernorm_pallas(x2d, gamma2d, beta2d, br, vmem_limit, H)
    y = (y2d[:, :H] if h_pad != H else y2d).reshape(B, S, H)
    return x, y


def _reference(x, gamma, beta):
    mean = jnp.mean(x, axis=-1, keepdims=True)
    var = jnp.mean((x - mean) ** 2, axis=-1, keepdims=True)
    return (x - mean) / jnp.sqrt(var + EPS) * gamma + beta


if __name__ == "__main__":
    key = jax.random.PRNGKey(0)
    kx, kg, kb, kx2 = jax.random.split(key, 4)

    B, S, H = 2, 8, 128
    x = jax.random.normal(kx, (B, S, H), dtype=jnp.float32)
    gamma = jnp.ones((H,), jnp.float32) + 0.01 * jax.random.normal(kg, (H,))
    beta = 0.01 * jax.random.normal(kb, (H,), dtype=jnp.float32)

    hidden_before_norm, y = hook_norm(x, gamma, beta)
    jax.block_until_ready((hidden_before_norm, y))
    assert jnp.allclose(hidden_before_norm, x), "hook value mismatch"
    assert jnp.allclose(y, _reference(x, gamma, beta), atol=1e-5, rtol=1e-5), \
        "layernorm mismatch"

    # Ragged-row check: rows % block_rows != 0 exercises the masked last block.
    B2, S2 = 2, 7  # rows = 14, block_rows = 8 -> last block has 6 valid rows
    x_r = jax.random.normal(kx2, (B2, S2, H), dtype=jnp.float32)
    hidden_r, y_r = hook_norm(x_r, gamma, beta)
    jax.block_until_ready((hidden_r, y_r))
    assert jnp.allclose(hidden_r, x_r), "hook value mismatch (ragged)"
    assert jnp.allclose(y_r, _reference(x_r, gamma, beta), atol=1e-5, rtol=1e-5), \
        "layernorm mismatch (ragged)"

    print("KERNEL_OK")
</pallas_src>

<mosaic_0001>
module attributes {stable_mosaic.version = 11 : i64} {
  func.func @_hooknorm_kernel(%arg0: i32, %arg1: memref<8x128xf32, #tpu.memory_space<vmem>>, %arg2: memref<1x128xf32, #tpu.memory_space<vmem>>, %arg3: memref<1x128xf32, #tpu.memory_space<vmem>>, %arg4: memref<8x128xf32, #tpu.memory_space<vmem>>) attributes {dimension_semantics = [#tpu.dimension_semantics<parallel>], iteration_bounds = array<i64: 2>, scalar_prefetch = 0 : i64, scratch_operands = 0 : i64, tpu.core_type = #tpu.core_type<tc>, window_params = [{transform_indices = @transform_0, window_bounds = array<i64: 8, 128>}, {pipeline_mode = #tpu.pipeline_mode<synchronous>, transform_indices = @transform_1, window_bounds = array<i64: 1, 128>}, {pipeline_mode = #tpu.pipeline_mode<synchronous>, transform_indices = @transform_2, window_bounds = array<i64: 1, 128>}, {transform_indices = @transform_3, window_bounds = array<i64: 8, 128>}]} {
    %c0 = arith.constant 0 : index
    %c0_0 = arith.constant 0 : index
    %0 = vector.load %arg1[%c0, %c0_0] : memref<8x128xf32, #tpu.memory_space<vmem>>, vector<8x128xf32>
    %cst = arith.constant dense<0.000000e+00> : vector<8xf32>
    %1 = vector.multi_reduction <add>, %0, %cst [1] : vector<8x128xf32> to vector<8xf32>
    %2 = vector.shape_cast %1 : vector<8xf32> to vector<8x1xf32>
    %cst_1 = arith.constant 7.812500e-03 : f32
    %3 = vector.broadcast %cst_1 : f32 to vector<8x1xf32>
    %4 = arith.mulf %2, %3 : vector<8x1xf32>
    %5 = vector.broadcast %4 : vector<8x1xf32> to vector<8x128xf32>
    %6 = arith.subf %0, %5 : vector<8x128xf32>
    %7 = arith.mulf %6, %6 : vector<8x128xf32>
    %cst_2 = arith.constant dense<0.000000e+00> : vector<8xf32>
    %8 = vector.multi_reduction <add>, %7, %cst_2 [1] : vector<8x128xf32> to vector<8xf32>
    %9 = vector.shape_cast %8 : vector<8xf32> to vector<8x1xf32>
    %cst_3 = arith.constant 7.812500e-03 : f32
    %10 = vector.broadcast %cst_3 : f32 to vector<8x1xf32>
    %11 = arith.mulf %9, %10 : vector<8x1xf32>
    %cst_4 = arith.constant 9.99999974E-6 : f32
    %12 = vector.broadcast %cst_4 : f32 to vector<8x1xf32>
    %13 = arith.addf %11, %12 : vector<8x1xf32>
    %14 = math.rsqrt %13 : vector<8x1xf32>
    %c0_5 = arith.constant 0 : index
    %c0_6 = arith.constant 0 : index
    %15 = vector.load %arg2[%c0_5, %c0_6] : memref<1x128xf32, #tpu.memory_space<vmem>>, vector<1x128xf32>
    %c0_7 = arith.constant 0 : index
    %c0_8 = arith.constant 0 : index
    %16 = vector.load %arg3[%c0_7, %c0_8] : memref<1x128xf32, #tpu.memory_space<vmem>>, vector<1x128xf32>
    %17 = vector.broadcast %14 : vector<8x1xf32> to vector<8x128xf32>
    %18 = arith.mulf %6, %17 : vector<8x128xf32>
    %19 = vector.broadcast %15 : vector<1x128xf32> to vector<8x128xf32>
    %20 = arith.mulf %18, %19 : vector<8x128xf32>
    %21 = vector.broadcast %16 : vector<1x128xf32> to vector<8x128xf32>
    %22 = arith.addf %20, %21 : vector<8x128xf32>
    %c0_9 = arith.constant 0 : index
    %c0_10 = arith.constant 0 : index
    %23 = vector.load %arg4[%c0_9, %c0_10] : memref<8x128xf32, #tpu.memory_space<vmem>>, vector<8x128xf32>
    tpu.vector_store %arg4[%c0_9, %c0_10], %22 {strides = array<i32>} : memref<8x128xf32, #tpu.memory_space<vmem>>, vector<8x128xf32>,
    return
  }
  func.func @transform_0(%arg0: i32) -> (i32, i32) {
    %c0_i32 = arith.constant 0 : i32
    %c0_i32_0 = arith.constant 0 : i32
    return %arg0, %c0_i32 : i32, i32
  }
  func.func @transform_1(%arg0: i32) -> (i32, i32) {
    %c0_i32 = arith.constant 0 : i32
    %c0_i32_0 = arith.constant 0 : i32
    %c0_i32_1 = arith.constant 0 : i32
    return %c0_i32, %c0_i32_0 : i32, i32
  }
  func.func @transform_2(%arg0: i32) -> (i32, i32) {
    %c0_i32 = arith.constant 0 : i32
    %c0_i32_0 = arith.constant 0 : i32
    %c0_i32_1 = arith.constant 0 : i32
    return %c0_i32, %c0_i32_0 : i32, i32
  }
  func.func @transform_3(%arg0: i32) -> (i32, i32) {
    %c0_i32 = arith.constant 0 : i32
    %c0_i32_0 = arith.constant 0 : i32
    return %arg0, %c0_i32 : i32, i32
  }
}

</mosaic_0001>

<bundles_post_ra>
// kernel: hook_norm.1
= control target key start
LH: loop header
LB: loop body
LE: loop exit
PB: predicated region body
PF: predicated region fallthrough
CT: control target
= control target key end

     0   :  { %8 = vsyncpa [#allocation3], 0  ;;  %s512_s0 = inlined_call_operand.vmem [shape: f32[16,128], index: 0, kind: input, shape index: {}]   ;;  %s513_s1 = inlined_call_operand.vmem [shape: f32[1,128], index: 1, kind: input, shape index: {}]   ;;  %s514_s2 = inlined_call_operand.vmem [shape: f32[1,128], index: 2, kind: input, shape index: {}]   ;;  %s515_s3 = inlined_call_operand.hbm [shape: f32[16,128], index: 3, kind: output, shape index: {}]  }
   0x1   :  { %10 = vsyncpa [#allocation3 + $0x1], 0  ;;  %s406_s12 = smov 0   ;;  %s408_s13 = smov 0  }
   0x2   :  { %s410_s14 = smov 0   ;;  %s412_s15 = smov 0  }
   0x3 LB: > { %s427_s16 = sadd.s32 4294967295, %s383_s15   ;;  %s268_s17 = sadd.s32 4294967294, %s383_s15   ;;  %s383_s15 = sphi %s412_s15, %s521_s15   ;;  %s379_s14 = sphi %s410_s14, %s520_s14   ;;  %s375_s13 = sphi %s408_s13, %s519_s13   ;;  %s371_s12 = sphi %s406_s12, %s518_s12  }
   0x4   : > { %s431_s18 = sadd.s32 1, %s383_s15   ;;  %s91_s19 = sadd.s32 1, %s379_s14 }
   0x5   : > { %s88_s20 = ssub.s32 %s383_s15, %s431_s18  ;;  %p101_p0 = scmp.ne.s32.totalorder %s379_s14, %s375_s13 }
   0x6   : > { %p89_p1 = scmp.eq.s32.totalorder %s88_s20, 0  ;;  %p102_p2 = scmp.eq.s32.totalorder %s427_s16, 1 }
   0x7   : > { %p107_p3 = scmp.ne.s32.totalorder %s375_s13, %s371_s12  ;;  %p108_p4 = scmp.eq.s32.totalorder %s268_s17, 1 }
   0x8   : > { %s442_s21 = scalar_select %p89_p1, %s379_s14, %s91_s19  }
   0x9   : > { %p444_p5 = por %p102_p2, %p101_p0  ;;  %p448_p6 = por %p108_p4, %p107_p3 }
   0xa   : > { %p271_p7 = scmp.ge.s32.totalorder %s383_s15, 1  ;;  %p139_p8 = scmp.lt.s32.totalorder %s383_s15, 3 }
   0xc   : > { %p140_p9 = pnand %p271_p7, %p139_p8 }
   0xd   : > { %p162_p10 = scmp.lt.s32.totalorder (!%p140_p9), %s427_s16, 1  ;;  %s159_s29 = sand.u32 (!%p140_p9), 1, %s375_s13   ;;  %v274_v9 = vld [vmem:[%s513_s1] ss:$0 sm:$0xff] (!%p140_p9) }
   0xe   : > { %143 = sbr.rel (%p140_p9) target bundleno = 351 (0x15f), region = 32  ;;  %s272_s30 = sshll.u32 (!%p140_p9), %s159_s29, 3  ;;  %v275_v11 = vld [vmem:[%s514_s2] ss:$0 sm:$0xff] (!%p140_p9) }
   0xf   : > { %s277_s8 = sshll.u32 (!%p140_p9), %s427_s16, 7  ;;  %s161_s9 = scalar_lea.vmem (!%p140_p9), [#allocation2], %s272_s30 }
  0x10   : > { %s209_s10 = sshll.u32 (!%p140_p9), %s161_s9, 4  ;;  %s470_s19 = scalar_lea.hbm (!%p140_p9), %s515_s3, %s277_s8  ;;  %s472_s10 = int_to_ptr.vmem [resolvable:$true] %s209_s10 }
  0x11   : > { %s196_s20 = scalar_lea.sflag (!%p140_p9), [#allocation3], %s159_s29 }
  0x15   : > { %s163_s24 = scalar_select %p162_p10, %s427_s16, 1 }
  0x16   : > { %s385_s16 = smov [#allocation2]  }
  0x17   : > { %s273_s25 = sshll.u32 %s163_s24, 3  ;;  %s321_s24 = scalar_lea.vmem %s472_s10, 128 }
  0x18   : > { %s165_s28 = scalar_lea.vmem %s512_s0, %s273_s25  ;;  %p322_p11 = scmp.ne.s32.totalorder %s472_s10, %s321_s24 }
  0x19   : > { %v166_v0 = vld [vmem:[%s165_s28] sm:$0xff]  ;;  %s325_s25 = sshll.u32 %s385_s16, 4  ;;  %s326_s25 = int_to_ptr.vmem [resolvable:$false] %s325_s25 }
  0x1a   : > { %167 = vadd.xlane.f32.xlu0 %v166_v0  ;;  %p323_p12 = pnand %p322_p11, %p444_p5  ;;  %s327_s26 = scalar_lea.vmem %s326_s25, 256 }
  0x1b   : > { %p328_p0 = scmp.lt.s32.totalorder %s472_s10, %s326_s25  ;;  %p329_p1 = scmp.lt.s32.totalorder %s327_s26, %s321_s24 }
  0x1c   : > { %p324_p13 = pneg %p323_p12 }
  0x1d   : > { %p330_p2 = por %p329_p1, %p328_p0 }
  0x1f   : > { %p331_p3 = pnand %p330_p2, %p324_p13 }
  0xa7   : > { %v168_v1 = vpop.xlane.xlu0 %167 }
  0xa8   : > { %v169_v2 = vmul.f32 0.0078125, %v168_v1 }
  0xaa   : > { %v170_v3 = vsub.f32 %v166_v0, %v169_v2 }
  0xac   : > { %v171_v4 = vmul.f32 %v170_v3, %v170_v3 }
  0xae   : > { %172 = vadd.xlane.f32.xlu0 %v171_v4 }
 0x13b   : > { %v173_v5 = vpop.xlane.xlu0 %172 }
 0x13c   : > { %v174_v6 = vmul.f32 0.0078125, %v173_v5 }
 0x13e   : > { %v175_v7 = vadd.f32 1e-05, %v174_v6 }
 0x140   : > { %319 = vrsqrt.f32 %v175_v7 }
 0x14a   : > { %v320_v8 = vpop.eup %319 }
 0x14b   : > { %v179_v10 = vmul.f32 %v320_v8, %v170_v3 }
 0x14d   : > { %v186_v12 = vmul.f32 %v274_v9, %v179_v10 }
 0x14f   : > { %v193_v13 = vadd.f32 %v275_v11, %v186_v12 }
 0x151   : > { %194 = vst [vmem:[%s161_s9] sm:$0xff] %v193_v13 }
 0x152   : > { %334 = shalt.err (!%p331_p3)
}
 0x153   : > { %s335_s27 = scalar_lea.hbm %s470_s19, 128  ;;  %s339_s30 = scalar_lea.hbm %s515_s3, 256 }
 0x154   : > { %p336_p4 = scmp.ne.s32.totalorder %s470_s19, %s335_s27  ;;  %p340_p9 = scmp.lt.u32.totalorder %s470_s19, %s515_s3 }
 0x155   : > { %p341_p10 = scmp.lt.u32.totalorder %s339_s30, %s335_s27  ;;  %p343_p12 = scmp.lt.u32.totalorder %s335_s27, %s470_s19 }
 0x156   : > { %p337_p7 = pnand %p336_p4, %p444_p5 }
 0x157   : > { %p342_p11 = por %p341_p10, %p340_p9 }
 0x158   : > { %p338_p8 = pneg %p337_p7 }
 0x159   : > { %p344_p13 = por %p343_p12, %p342_p11 }
 0x15b   : > { %p345_p0 = pnand %p344_p13, %p338_p8 }
 0x15d   : > { %348 = shalt.err (!%p345_p0)
}
 0x15e   : > { %280 = dma.vmem_to_hbm [thread:$0]  (%p444_p5), %s472_s10, 128, %s470_s19, %s196_s20  }
 0x15f PF: > { %p286_p1 = scmp.ge.s32.totalorder %s383_s15, 2  ;;  %s221_s6 = sand.u32 1, %s371_s12  }
 0x160   : > { %s222_s7 = scalar_lea.sflag [#allocation3], %s221_s6 }
 0x161   : > { %p283_p2 = pnand %p286_p1, %p448_p6 }
 0x163   : > { %366 = dma.done.wait (!%p283_p2), %s222_s7, 128  }
 0x164   : > { %368 = vsyncadd (!%p283_p2), %s222_s7, 4294967168  ;;  %p13_p3 = scmp.ge.s32.totalorder %s431_s18, 4   ;;  %s518_s12 = smov %s375_s13 }
 0x165   : > { %s519_s13 = smov %s379_s14  ;;  %s520_s14 = smov %s442_s21 }
 0x166   : > { %s521_s15 = smov %s431_s18  ;;  %15 = sbr.rel (!%p13_p3) target bundleno = 3 (0x3), region = 67 }
 0x16d   :  { %227 = vsyncpa [#allocation3], 1 }
 0x16e   :  { %229 = vsyncpa [#allocation3 + $0x1], 1 }

</bundles_post_ra>
